<compile_context>
chip_gen: v7x
topology: tpu7x:2x2x1
jax: 0.10.0
libtpu: 0.0.40
codegen_flags: <defaults>
</compile_context>

<pallas_src>
import functools

import jax
import jax.numpy as jnp
from jax.experimental import pallas as pl
from jax.experimental.pallas import tpu as pltpu

N_HIDDEN = 8   # matches the module default
LANE = 128     # vreg lane width


def _round_up(x, m):
    return ((x + m - 1) // m) * m


def _cdiv(a, b):
    return (a + b - 1) // b


def mlp_kernel(obs_ref, w_in_ref, b_in_ref, w_h_ref, b_h_ref, w_out_ref, b_out_ref, out_ref):
    # Input layer: bf16 MXU matmul, f32 accumulate + bias + ReLU.
    h = jnp.dot(obs_ref[...], w_in_ref[...], preferred_element_type=jnp.float32) + b_in_ref[...]
    h = jnp.maximum(h, 0.0)

    # Hoist the shared hidden-layer weight load and the (1, hid_p) bias vreg out of
    # the unrolled loop. No materialized broadcast: implicit (1,H)->(tb,H)
    # broadcasting inside the add is near-free on the VPU.
    w_h = w_h_ref[...]
    b_h = b_h_ref[...]

    # Hidden stack: the SAME Linear+ReLU applied N_HIDDEN times (shared weights,
    # exactly as the PyTorch list-multiplication produces).
    for _ in range(N_HIDDEN):
        h = jnp.dot(h.astype(jnp.bfloat16), w_h, preferred_element_type=jnp.float32) + b_h
        h = jnp.maximum(h, 0.0)

    # Output layer: Linear (no activation). The matmul uses the lane-padded (hid_p, 128)
    # weight (128-aligned MXU shapes); only the real output lanes are stored.
    o = jnp.dot(h.astype(jnp.bfloat16), w_out_ref[...], preferred_element_type=jnp.float32)
    out_dim = out_ref.shape[-1]
    out_ref[...] = (o[:, :out_dim] + b_out_ref[...]).astype(out_ref.dtype)


def prepare_params(params):
    """One-time prep: transpose weights to [in, out] layout, lane-pad the hidden
    feature dim to 128 (zero padding is exact through ReLU / matmul), and cast
    matmul operands to bf16. Biases stay f32 (adds run on the VPU in f32)."""
    hidden_dim, input_dim = params["w_in"].shape
    output_dim = params["w_out"].shape[0]
    hid_p = _round_up(hidden_dim, LANE)
    out_p = _round_up(output_dim, LANE)

    def pad_t(w, rows, cols):
        wt = w.T.astype(jnp.float32)
        return jnp.pad(wt, ((0, rows - wt.shape[0]), (0, cols - wt.shape[1])))

    def pad_b(b, cols):
        b = b.astype(jnp.float32)
        return jnp.pad(b, (0, cols - b.shape[0])).reshape(1, cols)

    prepped = {
        "w_in": pad_t(params["w_in"], input_dim, hid_p).astype(jnp.bfloat16),   # (in_dim, hid_p)
        "b_in": pad_b(params["b_in"], hid_p),                                   # (1, hid_p) f32
        "w_h": pad_t(params["w_h"], hid_p, hid_p).astype(jnp.bfloat16),         # (hid_p, hid_p)
        "b_h": pad_b(params["b_h"], hid_p),                                     # (1, hid_p) f32
        "w_out": pad_t(params["w_out"], hid_p, out_p).astype(jnp.bfloat16),     # (hid_p, out_p)
        "b_out": params["b_out"].astype(jnp.float32).reshape(1, output_dim),    # (1, out_dim) f32
    }
    return prepped, output_dim


@functools.partial(jax.jit, static_argnames=("out_dim", "block_batch"))
def nn_forward(obs, w_in, b_in, w_h, b_h, w_out, b_out, *, out_dim, block_batch=1024):
    """obs: [B, input_dim] (any float dtype). Padded/transposed params from
    prepare_params. Returns [B, out_dim] float32."""
    B, in_dim = obs.shape
    hid_p = w_in.shape[1]

    # Batch tile: aim for >=2 grid steps (both v7x TensorCores) whenever the batch
    # allows it; rows kept a multiple of 16 (bf16 sublane packing of the obs block).
    target_tiles = max(2, _cdiv(B, block_batch))
    tb = min(_round_up(_cdiv(B, target_tiles), 16), _round_up(B, 16))
    b_pad = _round_up(B, tb)

    # Only batch rows are padded; obs is streamed in bf16 (halves input DMA bytes).
    obs_bf = obs.astype(jnp.bfloat16)
    if b_pad != B:
        obs_bf = jnp.pad(obs_bf, ((0, b_pad - B), (0, 0)))

    const2 = lambda i: (0, 0)
    out_padded = pl.pallas_call(
        mlp_kernel,
        out_shape=jax.ShapeDtypeStruct((b_pad, out_dim), jnp.float32),
        grid_spec=pltpu.PrefetchScalarGridSpec(
            num_scalar_prefetch=0,
            grid=(b_pad // tb,),
            in_specs=[
                pl.BlockSpec((tb, in_dim), lambda i: (i, 0)),   # obs tile (pipelined)
                pl.BlockSpec((in_dim, hid_p), const2),          # w_in  (resident)
                pl.BlockSpec((1, hid_p), const2),               # b_in
                pl.BlockSpec((hid_p, hid_p), const2),           # w_h
                pl.BlockSpec((1, hid_p), const2),               # b_h
                pl.BlockSpec((hid_p, w_out.shape[1]), const2),  # w_out
                pl.BlockSpec((1, out_dim), const2),             # b_out
            ],
            out_specs=pl.BlockSpec((tb, out_dim), lambda i: (i, 0)),
        ),
        compiler_params=pltpu.CompilerParams(
            dimension_semantics=("parallel",),   # both TensorCores on v7x
        ),
    )(obs_bf, w_in, b_in, w_h, b_h, w_out, b_out)

    # Drop only the batch padding rows (no wide lane-padded second pass).
    return out_padded[:B] if b_pad != B else out_padded


def init_params(key, input_dim, output_dim, hidden_dim=20):
    """Deterministic synthetic init (uniform(-1/sqrt(fan_in), 1/sqrt(fan_in)),
    same distribution family as PyTorch's default Linear init)."""
    ks = jax.random.split(key, 6)

    def unif(k, shape, fan_in):
        bound = 1.0 / jnp.sqrt(jnp.float32(fan_in))
        return jax.random.uniform(k, shape, jnp.float32, -bound, bound)

    return {
        "w_in": unif(ks[0], (hidden_dim, input_dim), input_dim),
        "b_in": unif(ks[1], (hidden_dim,), input_dim),
        "w_h": unif(ks[2], (hidden_dim, hidden_dim), hidden_dim),
        "b_h": unif(ks[3], (hidden_dim,), hidden_dim),
        "w_out": unif(ks[4], (output_dim, hidden_dim), hidden_dim),
        "b_out": unif(ks[5], (output_dim,), hidden_dim),
    }


def nn_forward_ref(obs, params):
    """Pure-JAX f32 reference identical to the PyTorch forward."""
    h = jnp.maximum(obs @ params["w_in"].T + params["b_in"], 0.0)
    for _ in range(N_HIDDEN):
        h = jnp.maximum(h @ params["w_h"].T + params["b_h"], 0.0)
    return h @ params["w_out"].T + params["b_out"]


if __name__ == "__main__":
    key = jax.random.PRNGKey(0)
    k_params, k_obs = jax.random.split(key)

    batch, input_dim, output_dim, hidden_dim = 8, 4, 3, 20
    params = init_params(k_params, input_dim, output_dim, hidden_dim)
    obs = jax.random.normal(k_obs, (batch, input_dim), jnp.float32)

    prepped, out_dim = prepare_params(params)
    out = nn_forward(
        obs,
        prepped["w_in"], prepped["b_in"],
        prepped["w_h"], prepped["b_h"],
        prepped["w_out"], prepped["b_out"],
        out_dim=out_dim,
    )
    jax.block_until_ready(out)

    ref = nn_forward_ref(obs, params)
    assert out.shape == (batch, output_dim)
    # bf16 matmul operands (f32 accumulation) -> slightly relaxed tolerance vs f32 ref.
    max_err = float(jnp.max(jnp.abs(out - ref)))
    assert jnp.allclose(out, ref, atol=5e-2, rtol=5e-2), f"max abs err {max_err}"

    print("KERNEL_OK")
</pallas_src>

<mosaic_0001>
module attributes {stable_mosaic.version = 11 : i64} {
  func.func @mlp_kernel(%arg0: i32, %arg1: memref<16x4xbf16, #tpu.memory_space<vmem>>, %arg2: memref<4x128xbf16, #tpu.memory_space<vmem>>, %arg3: memref<1x128xf32, #tpu.memory_space<vmem>>, %arg4: memref<128x128xbf16, #tpu.memory_space<vmem>>, %arg5: memref<1x128xf32, #tpu.memory_space<vmem>>, %arg6: memref<128x128xbf16, #tpu.memory_space<vmem>>, %arg7: memref<1x3xf32, #tpu.memory_space<vmem>>, %arg8: memref<16x3xf32, #tpu.memory_space<vmem>>) attributes {dimension_semantics = [#tpu.dimension_semantics<parallel>], iteration_bounds = array<i64: 1>, scalar_prefetch = 0 : i64, scratch_operands = 0 : i64, tpu.core_type = #tpu.core_type<tc>, window_params = [{transform_indices = @transform_0, window_bounds = array<i64: 16, 4>}, {pipeline_mode = #tpu.pipeline_mode<synchronous>, transform_indices = @transform_1, window_bounds = array<i64: 4, 128>}, {pipeline_mode = #tpu.pipeline_mode<synchronous>, transform_indices = @transform_2, window_bounds = array<i64: 1, 128>}, {pipeline_mode = #tpu.pipeline_mode<synchronous>, transform_indices = @transform_3, window_bounds = array<i64: 128, 128>}, {pipeline_mode = #tpu.pipeline_mode<synchronous>, transform_indices = @transform_4, window_bounds = array<i64: 1, 128>}, {pipeline_mode = #tpu.pipeline_mode<synchronous>, transform_indices = @transform_5, window_bounds = array<i64: 128, 128>}, {pipeline_mode = #tpu.pipeline_mode<synchronous>, transform_indices = @transform_6, window_bounds = array<i64: 1, 3>}, {transform_indices = @transform_7, window_bounds = array<i64: 16, 3>}]} {
    %c0 = arith.constant 0 : index
    %c0_0 = arith.constant 0 : index
    %0 = vector.load %arg1[%c0, %c0_0] : memref<16x4xbf16, #tpu.memory_space<vmem>>, vector<16x4xbf16>
    %c0_1 = arith.constant 0 : index
    %c0_2 = arith.constant 0 : index
    %1 = vector.load %arg2[%c0_1, %c0_2] : memref<4x128xbf16, #tpu.memory_space<vmem>>, vector<4x128xbf16>
    %cst = arith.constant dense<0.000000e+00> : vector<16x128xf32>
    %2 = tpu.matmul %0, %1, %cst {dimension_numbers = #tpu.dot_dimension_numbers<[1], [0], [0], [1], [0, 0, 1, 1], [], []>} : vector<16x4xbf16>, vector<4x128xbf16>, vector<16x128xf32> -> vector<16x128xf32>
    %c0_3 = arith.constant 0 : index
    %c0_4 = arith.constant 0 : index
    %3 = vector.load %arg3[%c0_3, %c0_4] : memref<1x128xf32, #tpu.memory_space<vmem>>, vector<1x128xf32>
    %4 = vector.broadcast %3 : vector<1x128xf32> to vector<16x128xf32>
    %5 = arith.addf %2, %4 : vector<16x128xf32>
    %cst_5 = arith.constant 0.000000e+00 : f32
    %6 = vector.broadcast %cst_5 : f32 to vector<16x128xf32>
    %7 = arith.maximumf %5, %6 : vector<16x128xf32>
    %c0_6 = arith.constant 0 : index
    %c0_7 = arith.constant 0 : index
    %8 = vector.load %arg4[%c0_6, %c0_7] : memref<128x128xbf16, #tpu.memory_space<vmem>>, vector<128x128xbf16>
    %c0_8 = arith.constant 0 : index
    %c0_9 = arith.constant 0 : index
    %9 = vector.load %arg5[%c0_8, %c0_9] : memref<1x128xf32, #tpu.memory_space<vmem>>, vector<1x128xf32>
    %10 = arith.truncf %7 : vector<16x128xf32> to vector<16x128xbf16>
    %cst_10 = arith.constant dense<0.000000e+00> : vector<16x128xf32>
    %11 = tpu.matmul %10, %8, %cst_10 {dimension_numbers = #tpu.dot_dimension_numbers<[1], [0], [0], [1], [0, 0, 1, 1], [], []>} : vector<16x128xbf16>, vector<128x128xbf16>, vector<16x128xf32> -> vector<16x128xf32>
    %12 = vector.broadcast %9 : vector<1x128xf32> to vector<16x128xf32>
    %13 = arith.addf %11, %12 : vector<16x128xf32>
    %cst_11 = arith.constant 0.000000e+00 : f32
    %14 = vector.broadcast %cst_11 : f32 to vector<16x128xf32>
    %15 = arith.maximumf %13, %14 : vector<16x128xf32>
    %16 = arith.truncf %15 : vector<16x128xf32> to vector<16x128xbf16>
    %cst_12 = arith.constant dense<0.000000e+00> : vector<16x128xf32>
    %17 = tpu.matmul %16, %8, %cst_12 {dimension_numbers = #tpu.dot_dimension_numbers<[1], [0], [0], [1], [0, 0, 1, 1], [], []>} : vector<16x128xbf16>, vector<128x128xbf16>, vector<16x128xf32> -> vector<16x128xf32>
    %18 = vector.broadcast %9 : vector<1x128xf32> to vector<16x128xf32>
    %19 = arith.addf %17, %18 : vector<16x128xf32>
    %cst_13 = arith.constant 0.000000e+00 : f32
    %20 = vector.broadcast %cst_13 : f32 to vector<16x128xf32>
    %21 = arith.maximumf %19, %20 : vector<16x128xf32>
    %22 = arith.truncf %21 : vector<16x128xf32> to vector<16x128xbf16>
    %cst_14 = arith.constant dense<0.000000e+00> : vector<16x128xf32>
    %23 = tpu.matmul %22, %8, %cst_14 {dimension_numbers = #tpu.dot_dimension_numbers<[1], [0], [0], [1], [0, 0, 1, 1], [], []>} : vector<16x128xbf16>, vector<128x128xbf16>, vector<16x128xf32> -> vector<16x128xf32>
    %24 = vector.broadcast %9 : vector<1x128xf32> to vector<16x128xf32>
    %25 = arith.addf %23, %24 : vector<16x128xf32>
    %cst_15 = arith.constant 0.000000e+00 : f32
    %26 = vector.broadcast %cst_15 : f32 to vector<16x128xf32>
    %27 = arith.maximumf %25, %26 : vector<16x128xf32>
    %28 = arith.truncf %27 : vector<16x128xf32> to vector<16x128xbf16>
    %cst_16 = arith.constant dense<0.000000e+00> : vector<16x128xf32>
    %29 = tpu.matmul %28, %8, %cst_16 {dimension_numbers = #tpu.dot_dimension_numbers<[1], [0], [0], [1], [0, 0, 1, 1], [], []>} : vector<16x128xbf16>, vector<128x128xbf16>, vector<16x128xf32> -> vector<16x128xf32>
    %30 = vector.broadcast %9 : vector<1x128xf32> to vector<16x128xf32>
    %31 = arith.addf %29, %30 : vector<16x128xf32>
    %cst_17 = arith.constant 0.000000e+00 : f32
    %32 = vector.broadcast %cst_17 : f32 to vector<16x128xf32>
    %33 = arith.maximumf %31, %32 : vector<16x128xf32>
    %34 = arith.truncf %33 : vector<16x128xf32> to vector<16x128xbf16>
    %cst_18 = arith.constant dense<0.000000e+00> : vector<16x128xf32>
    %35 = tpu.matmul %34, %8, %cst_18 {dimension_numbers = #tpu.dot_dimension_numbers<[1], [0], [0], [1], [0, 0, 1, 1], [], []>} : vector<16x128xbf16>, vector<128x128xbf16>, vector<16x128xf32> -> vector<16x128xf32>
    %36 = vector.broadcast %9 : vector<1x128xf32> to vector<16x128xf32>
    %37 = arith.addf %35, %36 : vector<16x128xf32>
    %cst_19 = arith.constant 0.000000e+00 : f32
    %38 = vector.broadcast %cst_19 : f32 to vector<16x128xf32>
    %39 = arith.maximumf %37, %38 : vector<16x128xf32>
    %40 = arith.truncf %39 : vector<16x128xf32> to vector<16x128xbf16>
    %cst_20 = arith.constant dense<0.000000e+00> : vector<16x128xf32>
    %41 = tpu.matmul %40, %8, %cst_20 {dimension_numbers = #tpu.dot_dimension_numbers<[1], [0], [0], [1], [0, 0, 1, 1], [], []>} : vector<16x128xbf16>, vector<128x128xbf16>, vector<16x128xf32> -> vector<16x128xf32>
    %42 = vector.broadcast %9 : vector<1x128xf32> to vector<16x128xf32>
    %43 = arith.addf %41, %42 : vector<16x128xf32>
    %cst_21 = arith.constant 0.000000e+00 : f32
    %44 = vector.broadcast %cst_21 : f32 to vector<16x128xf32>
    %45 = arith.maximumf %43, %44 : vector<16x128xf32>
    %46 = arith.truncf %45 : vector<16x128xf32> to vector<16x128xbf16>
    %cst_22 = arith.constant dense<0.000000e+00> : vector<16x128xf32>
    %47 = tpu.matmul %46, %8, %cst_22 {dimension_numbers = #tpu.dot_dimension_numbers<[1], [0], [0], [1], [0, 0, 1, 1], [], []>} : vector<16x128xbf16>, vector<128x128xbf16>, vector<16x128xf32> -> vector<16x128xf32>
    %48 = vector.broadcast %9 : vector<1x128xf32> to vector<16x128xf32>
    %49 = arith.addf %47, %48 : vector<16x128xf32>
    %cst_23 = arith.constant 0.000000e+00 : f32
    %50 = vector.broadcast %cst_23 : f32 to vector<16x128xf32>
    %51 = arith.maximumf %49, %50 : vector<16x128xf32>
    %52 = arith.truncf %51 : vector<16x128xf32> to vector<16x128xbf16>
    %cst_24 = arith.constant dense<0.000000e+00> : vector<16x128xf32>
    %53 = tpu.matmul %52, %8, %cst_24 {dimension_numbers = #tpu.dot_dimension_numbers<[1], [0], [0], [1], [0, 0, 1, 1], [], []>} : vector<16x128xbf16>, vector<128x128xbf16>, vector<16x128xf32> -> vector<16x128xf32>
    %54 = vector.broadcast %9 : vector<1x128xf32> to vector<16x128xf32>
    %55 = arith.addf %53, %54 : vector<16x128xf32>
    %cst_25 = arith.constant 0.000000e+00 : f32
    %56 = vector.broadcast %cst_25 : f32 to vector<16x128xf32>
    %57 = arith.maximumf %55, %56 : vector<16x128xf32>
    %58 = arith.truncf %57 : vector<16x128xf32> to vector<16x128xbf16>
    %c0_26 = arith.constant 0 : index
    %c0_27 = arith.constant 0 : index
    %59 = vector.load %arg6[%c0_26, %c0_27] : memref<128x128xbf16, #tpu.memory_space<vmem>>, vector<128x128xbf16>
    %cst_28 = arith.constant dense<0.000000e+00> : vector<16x128xf32>
    %60 = tpu.matmul %58, %59, %cst_28 {dimension_numbers = #tpu.dot_dimension_numbers<[1], [0], [0], [1], [0, 0, 1, 1], [], []>} : vector<16x128xbf16>, vector<128x128xbf16>, vector<16x128xf32> -> vector<16x128xf32>
    %61 = vector.extract_strided_slice %60 {offsets = [0, 0], sizes = [16, 3], strides = [1, 1]} : vector<16x128xf32> to vector<16x3xf32>
    %c0_29 = arith.constant 0 : index
    %c0_30 = arith.constant 0 : index
    %62 = vector.load %arg7[%c0_29, %c0_30] : memref<1x3xf32, #tpu.memory_space<vmem>>, vector<1x3xf32>
    %63 = vector.broadcast %62 : vector<1x3xf32> to vector<16x3xf32>
    %64 = arith.addf %61, %63 : vector<16x3xf32>
    %c0_31 = arith.constant 0 : index
    %c0_32 = arith.constant 0 : index
    %65 = vector.load %arg8[%c0_31, %c0_32] : memref<16x3xf32, #tpu.memory_space<vmem>>, vector<16x3xf32>
    tpu.vector_store %arg8[%c0_31, %c0_32], %64 {strides = array<i32>} : memref<16x3xf32, #tpu.memory_space<vmem>>, vector<16x3xf32>,
    return
  }
  func.func @transform_0(%arg0: i32) -> (i32, i32) {
    %c0_i32 = arith.constant 0 : i32
    %c0_i32_0 = arith.constant 0 : i32
    return %arg0, %c0_i32 : i32, i32
  }
  func.func @transform_1(%arg0: i32) -> (i32, i32) {
    %c0_i32 = arith.constant 0 : i32
    %c0_i32_0 = arith.constant 0 : i32
    %c0_i32_1 = arith.constant 0 : i32
    return %c0_i32, %c0_i32_0 : i32, i32
  }
  func.func @transform_2(%arg0: i32) -> (i32, i32) {
    %c0_i32 = arith.constant 0 : i32
    %c0_i32_0 = arith.constant 0 : i32
    %c0_i32_1 = arith.constant 0 : i32
    return %c0_i32, %c0_i32_0 : i32, i32
  }
  func.func @transform_3(%arg0: i32) -> (i32, i32) {
    %c0_i32 = arith.constant 0 : i32
    %c0_i32_0 = arith.constant 0 : i32
    %c0_i32_1 = arith.constant 0 : i32
    return %c0_i32, %c0_i32_0 : i32, i32
  }
  func.func @transform_4(%arg0: i32) -> (i32, i32) {
    %c0_i32 = arith.constant 0 : i32
    %c0_i32_0 = arith.constant 0 : i32
    %c0_i32_1 = arith.constant 0 : i32
    return %c0_i32, %c0_i32_0 : i32, i32
  }
  func.func @transform_5(%arg0: i32) -> (i32, i32) {
    %c0_i32 = arith.constant 0 : i32
    %c0_i32_0 = arith.constant 0 : i32
    %c0_i32_1 = arith.constant 0 : i32
    return %c0_i32, %c0_i32_0 : i32, i32
  }
  func.func @transform_6(%arg0: i32) -> (i32, i32) {
    %c0_i32 = arith.constant 0 : i32
    %c0_i32_0 = arith.constant 0 : i32
    %c0_i32_1 = arith.constant 0 : i32
    return %c0_i32, %c0_i32_0 : i32, i32
  }
  func.func @transform_7(%arg0: i32) -> (i32, i32) {
    %c0_i32 = arith.constant 0 : i32
    %c0_i32_0 = arith.constant 0 : i32
    return %arg0, %c0_i32 : i32, i32
  }
}

</mosaic_0001>

<bundles_post_ra>
// kernel: nn_forward.1
= control target key start
LH: loop header
LB: loop body
LE: loop exit
PB: predicated region body
PF: predicated region fallthrough
CT: control target
= control target key end

     0   :  { %12 = vsyncpa [#allocation3], 0  ;;  %s1311_s0 = inlined_call_operand.vmem [shape: bf16[16,4], index: 0, kind: input, shape index: {}]   ;;  %s1312_s1 = inlined_call_operand.vmem [shape: bf16[4,128], index: 1, kind: input, shape index: {}]   ;;  %s1313_s2 = inlined_call_operand.vmem [shape: f32[1,128], index: 2, kind: input, shape index: {}]   ;;  %s1314_s3 = inlined_call_operand.hbm [shape: bf16[128,128], index: 3, kind: input, shape index: {}]   ;;  %s1315_s4 = inlined_call_operand.vmem [shape: f32[1,128], index: 4, kind: input, shape index: {}]   ;;  %s1316_s5 = inlined_call_operand.hbm [shape: bf16[128,128], index: 5, kind: input, shape index: {}]   ;;  %s1317_s6 = inlined_call_operand.vmem [shape: f32[1,3], index: 6, kind: input, shape index: {}]   ;;  %s1318_s7 = inlined_call_operand.vmem [shape: f32[16,3], index: 7, kind: output, shape index: {}]  }
   0x1   :  { %13 = vsyncpa [#allocation5], 0  ;;  %s1029_s24 = smov [#allocation2]   ;;  %s981_s28 = scalar_lea.hbm %s1314_s3, 1024 }
   0x2   :  { %s25_s25 = sshll.u32 %s1029_s24, 4  ;;  %p982_p0 = scmp.ne.s32.totalorder %s1314_s3, %s981_s28  ;;  %s26_s25 = int_to_ptr.vmem [resolvable:$true] %s25_s25 }
   0x3   :  { %p985_p1 = scmp.lt.u32.totalorder %s981_s28, %s1314_s3 }
   0x5   :  { %p987_p2 = pnand %p985_p1, %p982_p0 }
   0x7   :  { %990 = shalt.err (!%p987_p2)
}
   0x8   :  { %s991_s10 = scalar_lea.vmem %s26_s25, 1024  ;;  %p996_p4 = scmp.lt.s32.totalorder %s26_s25, %s26_s25 }
   0x9   :  { %p992_p3 = scmp.ne.s32.totalorder %s26_s25, %s991_s10  ;;  %p997_p5 = scmp.lt.s32.totalorder %s991_s10, %s991_s10 }
   0xb   :  { %p998_p6 = por %p997_p5, %p996_p4 }
   0xd   :  { %p999_p7 = pnand %p998_p6, %p992_p3 }
   0xf   :  { %1002 = shalt.err (!%p999_p7)
}
  0x10   :  { %s1030_s11 = smov 64   ;;  %s1031_s12 = smov 4  }
  0x11   :  { %31 = dma.hbm_to_vmem [thread:$0]  %s1314_s3, 1024, %s26_s25, [#allocation3], %s1030_s11, %s1030_s11, %s1031_s12  }
  0x12   :  { %s1032_s15 = smov [#allocation4]   ;;  %s1003_s19 = scalar_lea.hbm %s1316_s5, 1024 }
  0x13   :  { %s39_s16 = sshll.u32 %s1032_s15, 4  ;;  %p1004_p8 = scmp.ne.s32.totalorder %s1316_s5, %s1003_s19  ;;  %s40_s16 = int_to_ptr.vmem [resolvable:$true] %s39_s16 }
  0x14   :  { %p1007_p9 = scmp.lt.u32.totalorder %s1003_s19, %s1316_s5 }
  0x16   :  { %p1009_p10 = pnand %p1007_p9, %p1004_p8 }
  0x18   :  { %1012 = shalt.err (!%p1009_p10)
}
  0x19   :  { %s1013_s24 = scalar_lea.vmem %s40_s16, 1024  ;;  %p1018_p12 = scmp.lt.s32.totalorder %s40_s16, %s40_s16 }
  0x1a   :  { %p1014_p11 = scmp.ne.s32.totalorder %s40_s16, %s1013_s24  ;;  %p1019_p13 = scmp.lt.s32.totalorder %s1013_s24, %s1013_s24 }
  0x1c   :  { %p1020_p0 = por %p1019_p13, %p1018_p12 }
  0x1e   :  { %p1021_p1 = pnand %p1020_p0, %p1014_p11 }
  0x20   :  { %1024 = shalt.err (!%p1021_p1)
}
  0x21   :  { %45 = dma.hbm_to_vmem [thread:$0]  %s1316_s5, 1024, %s40_s16, [#allocation5], %s1030_s11, %s1030_s11, %s1031_s12  }
  0x22   :  { %1025 = dma.done.wait [#allocation3], 1024  }
  0x23   :  { %1026 = vsyncadd [#allocation3], 4294966272 }
  0x24   :  { %1027 = dma.done.wait [#allocation5], 1024  }
  0x25   :  { %1028 = vsyncadd [#allocation5], 4294966272  ;;  %v1033_v0 = vmov 0.0   ;;  %vm1034_vm0 = vmmov 0   ;;  %vm74_vm1 = vcmask 1041408   ;;  %v964_v3 = vld [vmem:[%s1311_s0] sm:$0xff]  }
  0x26   :  { %772 = vmatprep.subr.bf16.mxu0 %v1033_v0  ;;  %774 = vmatprep.mubr.msk.bf16.mxu0 %vm1034_vm0, %v1033_v0  ;;  %v57_v1 = vld [vmem:[%s1312_s1] sm:$0x3]  ;;  %vm70_vm2 = vcmask 31744   ;;  %v1115_v5 = vld [vmem:[#allocation2 + $0x8] sm:$0xff]   ;;  %v1121_v6 = vld [vmem:[#allocation2 + $0x10] sm:$0xff]   ;;  %vm659_vm3 = vcmask 23552  }
  0x27   :  { %778 = vmatprep.subr.bf16.mxu1 %v1033_v0  ;;  %794 = vmatprep.mubr.msk.bf16.mxu1 %vm1034_vm0, %v1033_v0  ;;  %v76_v2 = vsel %vm74_vm1, %v57_v1, 0  ;;  %v1111_v4 = vld [vmem:[#allocation2] sm:$0xff]   ;;  %v1126_v7 = vld [vmem:[#allocation2 + $0x18] sm:$0xff]   ;;  %v1141_v9 = vld [vmem:[#allocation2 + $0x28] sm:$0xff]  }
  0x28   :  { %773 = vmatpush3.bf16.msra.mxu0 %v76_v2  ;;  %779 = vmatpush3.bf16.msra.mxu1 %v1111_v4  ;;  %v1135_v8 = vld [vmem:[#allocation2 + $0x20] sm:$0xff]   ;;  %v1150_v10 = vld [vmem:[#allocation2 + $0x30] sm:$0xff]   ;;  %v1156_v11 = vld [vmem:[#allocation2 + $0x38] sm:$0xff]  }
  0x29   :  { %798 = vmatprep.subr.bf16.mxu0 %v1033_v0  ;;  %780 = vmatprep.subr.bf16.mxu1 %v1033_v0  ;;  %v668_v12 = vld [vmem:[%s1313_s2] ss:$0 sm:$0xff] }
  0x2a   :  { %v1186_v22 = vld [vmem:[%s1315_s4] ss:$0 sm:$0xff] }
  0x2b   :  { %775 = vmatmul.mubr.msk.bf16.vlgmr.msra.gmra.mrb[0].mxu0 %vm70_vm2, %v964_v3 }
  0x2c   :  { %799 = vmatpush3.bf16.msra.mxu0 %v1111_v4  ;;  %814 = vmatprep.mubr.msk.bf16.mxu0 %vm1034_vm0, %v1033_v0 }
  0x2d   :  { %800 = vmatprep.subr.bf16.mxu0 %v1033_v0  ;;  %781 = vmatpush3.bf16.msra.mxu1 %v1115_v5 }
  0x2e   :  { %782 = vmatprep.subr.bf16.mxu1 %v1033_v0 }
  0x30   :  { %801 = vmatpush3.bf16.msra.mxu0 %v1115_v5 }
  0x31   :  { %802 = vmatprep.subr.bf16.mxu0 %v1033_v0  ;;  %783 = vmatpush3.bf16.msra.mxu1 %v1121_v6 }
  0x32   :  { %784 = vmatprep.subr.bf16.mxu1 %v1033_v0 }
  0x34   :  { %803 = vmatpush3.bf16.msra.mxu0 %v1121_v6 }
  0x35   :  { %804 = vmatprep.subr.bf16.mxu0 %v1033_v0  ;;  %785 = vmatpush3.bf16.msra.mxu1 %v1126_v7 }
  0x36   :  { %786 = vmatprep.subr.bf16.mxu1 %v1033_v0 }
  0x38   :  { %805 = vmatpush3.bf16.msra.mxu0 %v1126_v7 }
  0x39   :  { %806 = vmatprep.subr.bf16.mxu0 %v1033_v0  ;;  %787 = vmatpush3.bf16.msra.mxu1 %v1135_v8 }
  0x3a   :  { %788 = vmatprep.subr.bf16.mxu1 %v1033_v0 }
  0x3c   :  { %807 = vmatpush3.bf16.msra.mxu0 %v1135_v8 }
  0x3d   :  { %808 = vmatprep.subr.bf16.mxu0 %v1033_v0  ;;  %789 = vmatpush3.bf16.msra.mxu1 %v1141_v9 }
  0x3e   :  { %790 = vmatprep.subr.bf16.mxu1 %v1033_v0 }
  0x40   :  { %809 = vmatpush3.bf16.msra.mxu0 %v1141_v9 }
  0x41   :  { %810 = vmatprep.subr.bf16.mxu0 %v1033_v0  ;;  %791 = vmatpush3.bf16.msra.mxu1 %v1150_v10 }
  0x42   :  { %792 = vmatprep.subr.bf16.mxu1 %v1033_v0 }
  0x44   :  { %811 = vmatpush3.bf16.msra.mxu0 %v1150_v10 }
  0x45   :  { %812 = vmatprep.subr.bf16.mxu0 %v1033_v0  ;;  %793 = vmatpush3.bf16.msra.mxu1 %v1156_v11 }
  0x46   :  { %818 = vmatprep.subr.bf16.mxu1 %v1033_v0 }
  0x48   :  { %813 = vmatpush3.bf16.msra.mxu0 %v1156_v11 }
  0x49   :  { %838 = vmatprep.subr.bf16.mxu0 %v1033_v0 }
  0xfe   :  { %v112_v13 = vpop.f32.mrb[0].mxu0 }
  0xff   :  { %v113_v14 = vadd.f32 %v668_v12, %v112_v13  ;;  %v776_v15 = vpop.f32.mrb[1].mxu0 }
 0x100   :  { %v115_v16 = vpop.f32.mrb[2].mxu0 }
 0x101   :  { %v116_v17 = vadd.f32 %v668_v12, %v115_v16  ;;  %v777_v18 = vpop.f32.mrb[3].mxu0  ;;  %v119_v19 = vmax.f32 %v113_v14, 0.0 }
 0x102   :  { %v977_v18 = vld [vmem:[#allocation4 + $0x20] sm:$0xff]  }
 0x103   :  { %v120_v20 = vmax.f32 %v116_v17, 0.0  ;;  %v976_v17 = vld [vmem:[#allocation4 + $0x18] sm:$0xff]  }
 0x105   :  { %v138_v21 = vpack.c.bf16 %v120_v20, %v119_v19  ;;  %v978_v19 = vld [vmem:[#allocation4 + $0x28] sm:$0xff]  }
 0x107   :  { %795 = vmatmul.mubr.bf16.vlgmr.msra.gmra.mrb[0].mxu1 %v138_v21 }
 0x108   :  { %819 = vmatpush3.bf16.msra.mxu1 %v1111_v4  ;;  %834 = vmatprep.mubr.msk.bf16.mxu1 %vm1034_vm0, %v1033_v0 }
 0x109   :  { %820 = vmatprep.subr.bf16.mxu1 %v1033_v0 }
 0x10c   :  { %821 = vmatpush3.bf16.msra.mxu1 %v1115_v5 }
 0x10d   :  { %822 = vmatprep.subr.bf16.mxu1 %v1033_v0 }
 0x110   :  { %823 = vmatpush3.bf16.msra.mxu1 %v1121_v6 }
 0x111   :  { %824 = vmatprep.subr.bf16.mxu1 %v1033_v0 }
 0x114   :  { %825 = vmatpush3.bf16.msra.mxu1 %v1126_v7 }
 0x115   :  { %826 = vmatprep.subr.bf16.mxu1 %v1033_v0 }
 0x118   :  { %827 = vmatpush3.bf16.msra.mxu1 %v1135_v8 }
 0x119   :  { %828 = vmatprep.subr.bf16.mxu1 %v1033_v0 }
 0x11c   :  { %829 = vmatpush3.bf16.msra.mxu1 %v1141_v9 }
 0x11d   :  { %830 = vmatprep.subr.bf16.mxu1 %v1033_v0 }
 0x120   :  { %831 = vmatpush3.bf16.msra.mxu1 %v1150_v10 }
 0x121   :  { %832 = vmatprep.subr.bf16.mxu1 %v1033_v0 }
 0x124   :  { %833 = vmatpush3.bf16.msra.mxu1 %v1156_v11 }
 0x125   :  { %858 = vmatprep.subr.bf16.mxu1 %v1033_v0 }
 0x1da   :  { %v227_v23 = vpop.f32.mrb[0].mxu1 }
 0x1db   :  { %v228_v24 = vadd.f32 %v1186_v22, %v227_v23  ;;  %v796_v25 = vpop.f32.mrb[1].mxu1 }
 0x1dc   :  { %v230_v26 = vpop.f32.mrb[2].mxu1 }
 0x1dd   :  { %v231_v27 = vadd.f32 %v1186_v22, %v230_v26  ;;  %v797_v28 = vpop.f32.mrb[3].mxu1  ;;  %v234_v29 = vmax.f32 %v228_v24, 0.0 }
 0x1df   :  { %v235_v30 = vmax.f32 %v231_v27, 0.0 }
 0x1e1   :  { %v236_v31 = vpack.c.bf16 %v235_v30, %v234_v29  ;;  %v979_v30 = vld [vmem:[#allocation4 + $0x30] sm:$0xff]  }
 0x1e3   :  { %815 = vmatmul.mubr.bf16.vlgmr.msra.gmra.mrb[4].mxu0 %v236_v31  ;;  %v980_v31 = vld [vmem:[#allocation4 + $0x38] sm:$0xff]  }
 0x1e4   :  { %839 = vmatpush3.bf16.msra.mxu0 %v1111_v4  ;;  %854 = vmatprep.mubr.msk.bf16.mxu0 %vm1034_vm0, %v1033_v0 }
 0x1e5   :  { %840 = vmatprep.subr.bf16.mxu0 %v1033_v0 }
 0x1e8   :  { %841 = vmatpush3.bf16.msra.mxu0 %v1115_v5 }
 0x1e9   :  { %842 = vmatprep.subr.bf16.mxu0 %v1033_v0 }
 0x1ec   :  { %843 = vmatpush3.bf16.msra.mxu0 %v1121_v6 }
 0x1ed   :  { %844 = vmatprep.subr.bf16.mxu0 %v1033_v0 }
 0x1f0   :  { %845 = vmatpush3.bf16.msra.mxu0 %v1126_v7 }
 0x1f1   :  { %846 = vmatprep.subr.bf16.mxu0 %v1033_v0 }
 0x1f4   :  { %847 = vmatpush3.bf16.msra.mxu0 %v1135_v8 }
 0x1f5   :  { %848 = vmatprep.subr.bf16.mxu0 %v1033_v0 }
 0x1f8   :  { %849 = vmatpush3.bf16.msra.mxu0 %v1141_v9 }
 0x1f9   :  { %850 = vmatprep.subr.bf16.mxu0 %v1033_v0 }
 0x1fc   :  { %851 = vmatpush3.bf16.msra.mxu0 %v1150_v10 }
 0x1fd   :  { %852 = vmatprep.subr.bf16.mxu0 %v1033_v0 }
 0x200   :  { %853 = vmatpush3.bf16.msra.mxu0 %v1156_v11 }
 0x201   :  { %878 = vmatprep.subr.bf16.mxu0 %v1033_v0 }
 0x2b6   :  { %v271_v32 = vpop.f32.mrb[4].mxu0 }
 0x2b7   :  { %v272_v33 = vadd.f32 %v1186_v22, %v271_v32  ;;  %v816_v34 = vpop.f32.mrb[5].mxu0 }
 0x2b8   :  { %v274_v35 = vpop.f32.mrb[6].mxu0 }
 0x2b9   :  { %v275_v36 = vadd.f32 %v1186_v22, %v274_v35  ;;  %v817_v37 = vpop.f32.mrb[7].mxu0  ;;  %v278_v38 = vmax.f32 %v272_v33, 0.0 }
 0x2bb   :  { %v279_v39 = vmax.f32 %v275_v36, 0.0 }
 0x2bd   :  { %v280_v40 = vpack.c.bf16 %v279_v39, %v278_v38 }
 0x2bf   :  { %835 = vmatmul.mubr.bf16.vlgmr.msra.gmra.mrb[4].mxu1 %v280_v40 }
 0x2c0   :  { %859 = vmatpush3.bf16.msra.mxu1 %v1111_v4  ;;  %874 = vmatprep.mubr.msk.bf16.mxu1 %vm1034_vm0, %v1033_v0 }
 0x2c1   :  { %860 = vmatprep.subr.bf16.mxu1 %v1033_v0 }
 0x2c4   :  { %861 = vmatpush3.bf16.msra.mxu1 %v1115_v5 }
 0x2c5   :  { %862 = vmatprep.subr.bf16.mxu1 %v1033_v0 }
 0x2c8   :  { %863 = vmatpush3.bf16.msra.mxu1 %v1121_v6 }
 0x2c9   :  { %864 = vmatprep.subr.bf16.mxu1 %v1033_v0 }
 0x2cc   :  { %865 = vmatpush3.bf16.msra.mxu1 %v1126_v7 }
 0x2cd   :  { %866 = vmatprep.subr.bf16.mxu1 %v1033_v0 }
 0x2d0   :  { %867 = vmatpush3.bf16.msra.mxu1 %v1135_v8 }
 0x2d1   :  { %868 = vmatprep.subr.bf16.mxu1 %v1033_v0 }
 0x2d4   :  { %869 = vmatpush3.bf16.msra.mxu1 %v1141_v9 }
 0x2d5   :  { %870 = vmatprep.subr.bf16.mxu1 %v1033_v0 }
 0x2d8   :  { %871 = vmatpush3.bf16.msra.mxu1 %v1150_v10 }
 0x2d9   :  { %872 = vmatprep.subr.bf16.mxu1 %v1033_v0 }
 0x2dc   :  { %873 = vmatpush3.bf16.msra.mxu1 %v1156_v11 }
 0x2dd   :  { %898 = vmatprep.subr.bf16.mxu1 %v1033_v0 }
 0x392   :  { %v315_v41 = vpop.f32.mrb[4].mxu1 }
 0x393   :  { %v316_v42 = vadd.f32 %v1186_v22, %v315_v41  ;;  %v836_v43 = vpop.f32.mrb[5].mxu1  ;;  %v688_v41 = vld [vmem:[%s1317_s6] ss:$0 sm:$0xff] }
 0x394   :  { %v318_v44 = vpop.f32.mrb[6].mxu1 }
 0x395   :  { %v319_v45 = vadd.f32 %v1186_v22, %v318_v44  ;;  %v837_v46 = vpop.f32.mrb[7].mxu1  ;;  %v322_v47 = vmax.f32 %v316_v42, 0.0 }
 0x397   :  { %v323_v48 = vmax.f32 %v319_v45, 0.0 }
 0x399   :  { %v324_v49 = vpack.c.bf16 %v323_v48, %v322_v47 }
 0x39b   :  { %855 = vmatmul.mubr.bf16.vlgmr.msra.gmra.mrb[8].mxu0 %v324_v49 }
 0x39c   :  { %879 = vmatpush3.bf16.msra.mxu0 %v1111_v4  ;;  %894 = vmatprep.mubr.msk.bf16.mxu0 %vm1034_vm0, %v1033_v0 }
 0x39d   :  { %880 = vmatprep.subr.bf16.mxu0 %v1033_v0 }
 0x3a0   :  { %881 = vmatpush3.bf16.msra.mxu0 %v1115_v5 }
 0x3a1   :  { %882 = vmatprep.subr.bf16.mxu0 %v1033_v0 }
 0x3a4   :  { %883 = vmatpush3.bf16.msra.mxu0 %v1121_v6 }
 0x3a5   :  { %884 = vmatprep.subr.bf16.mxu0 %v1033_v0 }
 0x3a8   :  { %885 = vmatpush3.bf16.msra.mxu0 %v1126_v7 }
 0x3a9   :  { %886 = vmatprep.subr.bf16.mxu0 %v1033_v0 }
 0x3ac   :  { %887 = vmatpush3.bf16.msra.mxu0 %v1135_v8 }
 0x3ad   :  { %888 = vmatprep.subr.bf16.mxu0 %v1033_v0 }
 0x3b0   :  { %889 = vmatpush3.bf16.msra.mxu0 %v1141_v9 }
 0x3b1   :  { %890 = vmatprep.subr.bf16.mxu0 %v1033_v0 }
 0x3b4   :  { %891 = vmatpush3.bf16.msra.mxu0 %v1150_v10 }
 0x3b5   :  { %892 = vmatprep.subr.bf16.mxu0 %v1033_v0 }
 0x3b8   :  { %893 = vmatpush3.bf16.msra.mxu0 %v1156_v11 }
 0x3b9   :  { %918 = vmatprep.subr.bf16.mxu0 %v1033_v0 }
 0x46e   :  { %v359_v50 = vpop.f32.mrb[8].mxu0 }
 0x46f   :  { %v360_v51 = vadd.f32 %v1186_v22, %v359_v50  ;;  %v856_v52 = vpop.f32.mrb[9].mxu0 }
 0x470   :  { %v362_v53 = vpop.f32.mrb[10].mxu0 }
 0x471   :  { %v363_v54 = vadd.f32 %v1186_v22, %v362_v53  ;;  %v857_v55 = vpop.f32.mrb[11].mxu0  ;;  %v366_v56 = vmax.f32 %v360_v51, 0.0 }
 0x473   :  { %v367_v57 = vmax.f32 %v363_v54, 0.0 }
 0x475   :  { %v368_v58 = vpack.c.bf16 %v367_v57, %v366_v56 }
 0x477   :  { %875 = vmatmul.mubr.bf16.vlgmr.msra.gmra.mrb[8].mxu1 %v368_v58 }
 0x478   :  { %899 = vmatpush3.bf16.msra.mxu1 %v1111_v4  ;;  %914 = vmatprep.mubr.msk.bf16.mxu1 %vm1034_vm0, %v1033_v0 }
 0x479   :  { %900 = vmatprep.subr.bf16.mxu1 %v1033_v0 }
 0x47c   :  { %901 = vmatpush3.bf16.msra.mxu1 %v1115_v5 }
 0x47d   :  { %902 = vmatprep.subr.bf16.mxu1 %v1033_v0 }
 0x480   :  { %903 = vmatpush3.bf16.msra.mxu1 %v1121_v6 }
 0x481   :  { %904 = vmatprep.subr.bf16.mxu1 %v1033_v0 }
 0x484   :  { %905 = vmatpush3.bf16.msra.mxu1 %v1126_v7 }
 0x485   :  { %906 = vmatprep.subr.bf16.mxu1 %v1033_v0 }
 0x488   :  { %907 = vmatpush3.bf16.msra.mxu1 %v1135_v8 }
 0x489   :  { %908 = vmatprep.subr.bf16.mxu1 %v1033_v0 }
 0x48c   :  { %909 = vmatpush3.bf16.msra.mxu1 %v1141_v9 }
 0x48d   :  { %910 = vmatprep.subr.bf16.mxu1 %v1033_v0 }
 0x490   :  { %911 = vmatpush3.bf16.msra.mxu1 %v1150_v10 }
 0x491   :  { %912 = vmatprep.subr.bf16.mxu1 %v1033_v0 }
 0x494   :  { %913 = vmatpush3.bf16.msra.mxu1 %v1156_v11 }
 0x495   :  { %938 = vmatprep.subr.bf16.mxu1 %v1033_v0 }
 0x54a   :  { %v403_v59 = vpop.f32.mrb[8].mxu1 }
 0x54b   :  { %v404_v60 = vadd.f32 %v1186_v22, %v403_v59  ;;  %v876_v61 = vpop.f32.mrb[9].mxu1 }
 0x54c   :  { %v406_v62 = vpop.f32.mrb[10].mxu1 }
 0x54d   :  { %v407_v63 = vadd.f32 %v1186_v22, %v406_v62  ;;  %v877_v1 = vpop.f32.mrb[11].mxu1  ;;  %v410_v2 = vmax.f32 %v404_v60, 0.0 }
 0x54f   :  { %v411_v3 = vmax.f32 %v407_v63, 0.0 }
 0x551   :  { %v412_v12 = vpack.c.bf16 %v411_v3, %v410_v2 }
 0x553   :  { %895 = vmatmul.mubr.bf16.vlgmr.msra.gmra.mrb[12].mxu0 %v412_v12 }
 0x554   :  { %919 = vmatpush3.bf16.msra.mxu0 %v1111_v4  ;;  %934 = vmatprep.mubr.msk.bf16.mxu0 %vm1034_vm0, %v1033_v0 }
 0x555   :  { %920 = vmatprep.subr.bf16.mxu0 %v1033_v0 }
 0x558   :  { %921 = vmatpush3.bf16.msra.mxu0 %v1115_v5 }
 0x559   :  { %922 = vmatprep.subr.bf16.mxu0 %v1033_v0 }
 0x55c   :  { %923 = vmatpush3.bf16.msra.mxu0 %v1121_v6 }
 0x55d   :  { %924 = vmatprep.subr.bf16.mxu0 %v1033_v0 }
 0x560   :  { %925 = vmatpush3.bf16.msra.mxu0 %v1126_v7 }
 0x561   :  { %926 = vmatprep.subr.bf16.mxu0 %v1033_v0 }
 0x564   :  { %927 = vmatpush3.bf16.msra.mxu0 %v1135_v8 }
 0x565   :  { %928 = vmatprep.subr.bf16.mxu0 %v1033_v0 }
 0x568   :  { %929 = vmatpush3.bf16.msra.mxu0 %v1141_v9  ;;  %v973_v9 = vld [vmem:[#allocation4] sm:$0xff]  }
 0x569   :  { %930 = vmatprep.subr.bf16.mxu0 %v1033_v0 }
 0x56c   :  { %931 = vmatpush3.bf16.msra.mxu0 %v1150_v10  ;;  %v974_v10 = vld [vmem:[#allocation4 + $0x8] sm:$0xff]  }
 0x56d   :  { %932 = vmatprep.subr.bf16.mxu0 %v1033_v0 }
 0x570   :  { %933 = vmatpush3.bf16.msra.mxu0 %v1156_v11  ;;  %v975_v11 = vld [vmem:[#allocation4 + $0x10] sm:$0xff]  }
 0x626   :  { %v447_v4 = vpop.f32.mrb[12].mxu0 }
 0x627   :  { %v448_v5 = vadd.f32 %v1186_v22, %v447_v4  ;;  %v896_v6 = vpop.f32.mrb[13].mxu0 }
 0x628   :  { %v450_v7 = vpop.f32.mrb[14].mxu0 }
 0x629   :  { %v451_v13 = vadd.f32 %v1186_v22, %v450_v7  ;;  %v897_v8 = vpop.f32.mrb[15].mxu0  ;;  %v454_v14 = vmax.f32 %v448_v5, 0.0 }
 0x62b   :  { %v455_v15 = vmax.f32 %v451_v13, 0.0 }
 0x62d   :  { %v456_v16 = vpack.c.bf16 %v455_v15, %v454_v14 }
 0x62f   :  { %915 = vmatmul.mubr.bf16.vlgmr.msra.gmra.mrb[12].mxu1 %v456_v16 }
 0x630   :  { %954 = vmatprep.mubr.msk.bf16.mxu1 %vm1034_vm0, %v1033_v0  ;;  %939 = vmatpush3.bf16.msra.mxu1 %v973_v9 }
 0x631   :  { %940 = vmatprep.subr.bf16.mxu1 %v1033_v0 }
 0x634   :  { %941 = vmatpush3.bf16.msra.mxu1 %v974_v10 }
 0x635   :  { %942 = vmatprep.subr.bf16.mxu1 %v1033_v0 }
 0x638   :  { %943 = vmatpush3.bf16.msra.mxu1 %v975_v11 }
 0x639   :  { %944 = vmatprep.subr.bf16.mxu1 %v1033_v0 }
 0x63c   :  { %945 = vmatpush3.bf16.msra.mxu1 %v976_v17 }
 0x63d   :  { %946 = vmatprep.subr.bf16.mxu1 %v1033_v0 }
 0x640   :  { %947 = vmatpush3.bf16.msra.mxu1 %v977_v18 }
 0x641   :  { %948 = vmatprep.subr.bf16.mxu1 %v1033_v0 }
 0x644   :  { %949 = vmatpush3.bf16.msra.mxu1 %v978_v19 }
 0x645   :  { %950 = vmatprep.subr.bf16.mxu1 %v1033_v0 }
 0x648   :  { %951 = vmatpush3.bf16.msra.mxu1 %v979_v30 }
 0x649   :  { %952 = vmatprep.subr.bf16.mxu1 %v1033_v0 }
 0x64c   :  { %953 = vmatpush3.bf16.msra.mxu1 %v980_v31 }
 0x702   :  { %v491_v20 = vpop.f32.mrb[12].mxu1 }
 0x703   :  { %v492_v21 = vadd.f32 %v1186_v22, %v491_v20  ;;  %v916_v23 = vpop.f32.mrb[13].mxu1 }
 0x704   :  { %v494_v24 = vpop.f32.mrb[14].mxu1 }
 0x705   :  { %v495_v25 = vadd.f32 %v1186_v22, %v494_v24  ;;  %v917_v26 = vpop.f32.mrb[15].mxu1  ;;  %v498_v27 = vmax.f32 %v492_v21, 0.0 }
 0x707   :  { %v499_v28 = vmax.f32 %v495_v25, 0.0 }
 0x709   :  { %v500_v29 = vpack.c.bf16 %v499_v28, %v498_v27 }
 0x70b   :  { %935 = vmatmul.mubr.bf16.vlgmr.msra.gmra.mrb[16].mxu0 %v500_v29 }
 0x7de   :  { %v535_v32 = vpop.f32.mrb[16].mxu0 }
 0x7df   :  { %v536_v33 = vadd.f32 %v1186_v22, %v535_v32  ;;  %v936_v34 = vpop.f32.mrb[17].mxu0 }
 0x7e0   :  { %v538_v35 = vpop.f32.mrb[18].mxu0 }
 0x7e1   :  { %v539_v36 = vadd.f32 %v1186_v22, %v538_v35  ;;  %v937_v37 = vpop.f32.mrb[19].mxu0  ;;  %v542_v38 = vmax.f32 %v536_v33, 0.0 }
 0x7e3   :  { %v543_v39 = vmax.f32 %v539_v36, 0.0 }
 0x7e5   :  { %v544_v40 = vpack.c.bf16 %v543_v39, %v542_v38 }
 0x7e7   :  { %955 = vmatmul.mubr.bf16.vlgmr.msra.gmra.mrb[16].mxu1 %v544_v40 }
 0x8ba   :  { %v643_v42 = vpop.f32.mrb[16].mxu1 }
 0x8bb   :  { %v657_v0 = vadd.f32 %v688_v41, %v643_v42  ;;  %v956_v43 = vpop.f32.mrb[17].mxu1 }
 0x8bc   :  { %v646_v44 = vpop.f32.mrb[18].mxu1 }
 0x8bd   :  { %660 = vst.msk [vmem:[%s1318_s7] sm:$0xff] %vm659_vm3, %v657_v0  ;;  %v658_v45 = vadd.f32 %v688_v41, %v646_v44  ;;  %v957_v22 = vpop.f32.mrb[19].mxu1 }
 0x8bf   :  { %661 = vst.msk [vmem:[%s1318_s7 + $0x8] sm:$0xff] %vm659_vm3, %v658_v45 }
 0x8c0   :  { %666 = vsyncpa [#allocation3], 1 }
 0x8c1   :  { %667 = vsyncpa [#allocation5], 1 }

</bundles_post_ra>
